<compile_context>
chip_gen: v5e
topology: v5e:2x2
jax: 0.10.0
libtpu: 0.0.40
codegen_flags: <defaults>
</compile_context>

<pallas_src>
import functools

import jax
import jax.numpy as jnp
from jax.experimental import pallas as pl
from jax.experimental.pallas import tpu as pltpu

_HIGHEST = jax.lax.Precision.HIGHEST


def _round_up(x, m):
    return ((x + m - 1) // m) * m


def _lstm_tagger_kernel(sent_ref, params_ref, out_ref, *, V, H):
    """Single-program LSTM tagger kernel.

    sent_ref   : (S,) int32 in SMEM (scalar prefetch) -- word ids.
    params_ref : (V + 2H + 1, W) f32 in VMEM, packed:
                   rows [0, V)        fused table  emb @ w_ih^T + bias  (g cols x2)
                   rows [V, V+H)      w_hh^T                            (g cols x2)
                   rows [V+H, V+2H)   w_out^T  (cols >= T zero-padded)
                   row  [V+2H]        b_out    (cols >= T set to -1e30)
    out_ref    : (S, W) f32 -- log_softmax(tag_space); pad lanes sliced off by
                 the wrapper.
    """
    S = out_ref.shape[0]
    G = 4 * H

    # Static sublane slices of the single packed operand (one DMA total).
    whh = params_ref[pl.ds(V, H), :][:, :G]             # (H, 4H)  recurrent weights
    wout = params_ref[pl.ds(V + H, H), :]               # (H, W)   hidden2tag weights
    bout = params_ref[pl.ds(V + 2 * H, 1), :]           # (1, W)   hidden2tag bias

    # Gather the fused per-word gate pre-activations.  S is static, so this is
    # an unrolled sequence of dynamic single-row loads; everything stays in
    # vregs (no VMEM scratch).
    xg = [params_ref[pl.ds(sent_ref[t], 1), :][:, :G] for t in range(S)]   # S x (1, 4H)

    h = jnp.zeros((1, H), jnp.float32)
    c = jnp.zeros((1, H), jnp.float32)
    hs = []
    for t in range(S):                                   # fully unrolled recurrence
        gates = xg[t] + jnp.dot(h, whh, preferred_element_type=jnp.float32)  # (1, 4H)
        sig = jax.nn.sigmoid(gates)                      # single EUP pass over the row
        i_g = sig[:, 0:H]
        f_g = sig[:, H:2 * H]
        g_g = 2.0 * sig[:, 2 * H:3 * H] - 1.0            # tanh(x) = 2*sigmoid(2x) - 1
        o_g = sig[:, 3 * H:4 * H]
        c = f_g * c + i_g * g_g
        h = o_g * jnp.tanh(c)
        hs.append(h)

    hstack = jnp.concatenate(hs, axis=0)                                     # (S, H)
    tag_space = jnp.dot(hstack, wout, preferred_element_type=jnp.float32) + bout

    # Numerically stable log_softmax over dim=1; padded lanes carry a -1e30
    # bias so exp(pad - m) == 0 and the normalizer matches the unpadded one.
    m = jnp.max(tag_space, axis=1, keepdims=True)
    lse = jnp.log(jnp.sum(jnp.exp(tag_space - m), axis=1, keepdims=True)) + m
    out_ref[...] = tag_space - lse


def prepare_params(emb_w, w_ih, w_hh, b_ih, b_hh, w_out, b_out):
    """One-time parameter layout (hoisted out of the per-call forward)."""
    V, _E = emb_w.shape
    H = w_hh.shape[1]
    T = w_out.shape[0]
    T_pad = _round_up(T, 128)
    W = max(_round_up(4 * H, 128), T_pad)

    f32 = jnp.float32
    bias = (b_ih + b_hh).astype(f32)
    # Fused embedding -> gate pre-activation table: (V, 4H).
    table = jnp.dot(emb_w.astype(f32), w_ih.T.astype(f32), precision=_HIGHEST) + bias
    whh_t = w_hh.T.astype(f32)                                           # (H, 4H)
    # tanh-via-sigmoid: pre-scale the g-gate (2H:3H) pre-activations by 2.
    table = table.at[:, 2 * H:3 * H].multiply(2.0)
    whh_t = whh_t.at[:, 2 * H:3 * H].multiply(2.0)

    def pad_lanes(a, fill=0.0):
        out = jnp.full((a.shape[0], W), fill, f32)
        return out.at[:, :a.shape[1]].set(a)

    wout_t = pad_lanes(w_out.T.astype(f32))                              # (H, W)
    bout = pad_lanes(b_out.astype(f32).reshape(1, T), fill=-1e30)        # (1, W)

    packed = jnp.concatenate(
        [pad_lanes(table), pad_lanes(whh_t), wout_t, bout], axis=0)      # (V+2H+1, W)
    dims = dict(V=V, H=H, T=T, W=W)
    return packed, dims


def make_lstm_tagger_forward(V, H, T, W):
    R = V + 2 * H + 1
    kernel = functools.partial(_lstm_tagger_kernel, V=V, H=H)

    @jax.jit
    def forward(sentence, packed_params):
        S = sentence.shape[0]
        grid_spec = pltpu.PrefetchScalarGridSpec(
            num_scalar_prefetch=1,                       # sentence ids -> SMEM
            grid=(1,),
            in_specs=[pl.BlockSpec((R, W), lambda i, sent: (0, 0))],
            out_specs=pl.BlockSpec((S, W), lambda i, sent: (0, 0)),
        )
        out_padded = pl.pallas_call(
            kernel,
            out_shape=jax.ShapeDtypeStruct((S, W), jnp.float32),
            grid_spec=grid_spec,
            compiler_params=pltpu.CompilerParams(dimension_semantics=("arbitrary",)),
        )(sentence.astype(jnp.int32), packed_params)
        return out_padded[:, :T]

    return forward


def _reference_forward(sentence, emb_w, w_ih, w_hh, b_ih, b_hh, w_out, b_out):
    embeds = emb_w[sentence]
    S = embeds.shape[0]
    H = w_hh.shape[1]
    h = jnp.zeros((H,), jnp.float32)
    c = jnp.zeros((H,), jnp.float32)
    hs = []
    for t in range(S):
        g = (jnp.dot(w_ih, embeds[t], precision=_HIGHEST) + b_ih
             + jnp.dot(w_hh, h, precision=_HIGHEST) + b_hh)
        i = jax.nn.sigmoid(g[0:H])
        f = jax.nn.sigmoid(g[H:2 * H])
        gg = jnp.tanh(g[2 * H:3 * H])
        o = jax.nn.sigmoid(g[3 * H:4 * H])
        c = f * c + i * gg
        h = o * jnp.tanh(c)
        hs.append(h)
    hs = jnp.stack(hs)                                    # (S, H)
    tag_space = jnp.dot(hs, w_out.T, precision=_HIGHEST) + b_out
    return jax.nn.log_softmax(tag_space, axis=1)


if __name__ == "__main__":
    # Small, forward-implied shapes.
    EMBEDDING_DIM = 32
    HIDDEN_DIM = 32
    VOCAB_SIZE = 16
    TAGSET_SIZE = 8
    SEQ_LEN = 8

    key = jax.random.PRNGKey(0)
    k_emb, k_wih, k_whh, k_bih, k_bhh, k_wout, k_bout, k_sent = jax.random.split(key, 8)

    emb_w = jax.random.normal(k_emb, (VOCAB_SIZE, EMBEDDING_DIM), jnp.float32) * 0.5
    w_ih = jax.random.normal(k_wih, (4 * HIDDEN_DIM, EMBEDDING_DIM), jnp.float32) * 0.1
    w_hh = jax.random.normal(k_whh, (4 * HIDDEN_DIM, HIDDEN_DIM), jnp.float32) * 0.1
    b_ih = jax.random.normal(k_bih, (4 * HIDDEN_DIM,), jnp.float32) * 0.1
    b_hh = jax.random.normal(k_bhh, (4 * HIDDEN_DIM,), jnp.float32) * 0.1
    w_out = jax.random.normal(k_wout, (TAGSET_SIZE, HIDDEN_DIM), jnp.float32) * 0.1
    b_out = jax.random.normal(k_bout, (TAGSET_SIZE,), jnp.float32) * 0.1

    sentence = jax.random.randint(k_sent, (SEQ_LEN,), 0, VOCAB_SIZE, jnp.int32)

    # One-time param prep (outside the per-call path), then the jitted forward.
    packed_params, dims = prepare_params(emb_w, w_ih, w_hh, b_ih, b_hh, w_out, b_out)
    packed_params = jax.block_until_ready(packed_params)
    forward = make_lstm_tagger_forward(**dims)

    out = forward(sentence, packed_params)
    out = jax.block_until_ready(out)

    ref = _reference_forward(sentence, emb_w, w_ih, w_hh, b_ih, b_hh, w_out, b_out)
    assert out.shape == (SEQ_LEN, TAGSET_SIZE)
    assert jnp.allclose(out, ref, atol=1e-4, rtol=1e-4), "mismatch vs reference"

    print("KERNEL_OK")
</pallas_src>

<mosaic_0001>
module attributes {stable_mosaic.version = 11 : i64} {
  func.func @_lstm_tagger_kernel(%arg0: i32, %arg1: memref<8xi32, #tpu.memory_space<smem>>, %arg2: memref<81x128xf32, #tpu.memory_space<vmem>>, %arg3: memref<8x128xf32, #tpu.memory_space<vmem>>) attributes {dimension_semantics = [#tpu.dimension_semantics<arbitrary>], iteration_bounds = array<i64: 1>, scalar_prefetch = 1 : i64, scratch_operands = 0 : i64, tpu.core_type = #tpu.core_type<tc>, window_params = [{pipeline_mode = #tpu.pipeline_mode<synchronous>, transform_indices = @transform_0, window_bounds = array<i64: 81, 128>}, {pipeline_mode = #tpu.pipeline_mode<synchronous>, transform_indices = @transform_1, window_bounds = array<i64: 8, 128>}]} {
    %c16 = arith.constant 16 : index
    %c0 = arith.constant 0 : index
    %0 = vector.load %arg2[%c16, %c0] : memref<81x128xf32, #tpu.memory_space<vmem>>, vector<32x128xf32>
    %c48 = arith.constant 48 : index
    %c0_0 = arith.constant 0 : index
    %1 = vector.load %arg2[%c48, %c0_0] : memref<81x128xf32, #tpu.memory_space<vmem>>, vector<32x128xf32>
    %c80 = arith.constant 80 : index
    %c0_1 = arith.constant 0 : index
    %2 = vector.load %arg2[%c80, %c0_1] : memref<81x128xf32, #tpu.memory_space<vmem>>, vector<1x128xf32>
    %c0_2 = arith.constant 0 : index
    %3 = memref.load %arg1[%c0_2] : memref<8xi32, #tpu.memory_space<smem>>
    %4 = arith.index_cast %3 : i32 to index
    %c0_3 = arith.constant 0 : index
    %5 = vector.load %arg2[%4, %c0_3] : memref<81x128xf32, #tpu.memory_space<vmem>>, vector<1x128xf32>
    %c1 = arith.constant 1 : index
    %6 = memref.load %arg1[%c1] : memref<8xi32, #tpu.memory_space<smem>>
    %7 = arith.index_cast %6 : i32 to index
    %c0_4 = arith.constant 0 : index
    %8 = vector.load %arg2[%7, %c0_4] : memref<81x128xf32, #tpu.memory_space<vmem>>, vector<1x128xf32>
    %c2 = arith.constant 2 : index
    %9 = memref.load %arg1[%c2] : memref<8xi32, #tpu.memory_space<smem>>
    %10 = arith.index_cast %9 : i32 to index
    %c0_5 = arith.constant 0 : index
    %11 = vector.load %arg2[%10, %c0_5] : memref<81x128xf32, #tpu.memory_space<vmem>>, vector<1x128xf32>
    %c3 = arith.constant 3 : index
    %12 = memref.load %arg1[%c3] : memref<8xi32, #tpu.memory_space<smem>>
    %13 = arith.index_cast %12 : i32 to index
    %c0_6 = arith.constant 0 : index
    %14 = vector.load %arg2[%13, %c0_6] : memref<81x128xf32, #tpu.memory_space<vmem>>, vector<1x128xf32>
    %c4 = arith.constant 4 : index
    %15 = memref.load %arg1[%c4] : memref<8xi32, #tpu.memory_space<smem>>
    %16 = arith.index_cast %15 : i32 to index
    %c0_7 = arith.constant 0 : index
    %17 = vector.load %arg2[%16, %c0_7] : memref<81x128xf32, #tpu.memory_space<vmem>>, vector<1x128xf32>
    %c5 = arith.constant 5 : index
    %18 = memref.load %arg1[%c5] : memref<8xi32, #tpu.memory_space<smem>>
    %19 = arith.index_cast %18 : i32 to index
    %c0_8 = arith.constant 0 : index
    %20 = vector.load %arg2[%19, %c0_8] : memref<81x128xf32, #tpu.memory_space<vmem>>, vector<1x128xf32>
    %c6 = arith.constant 6 : index
    %21 = memref.load %arg1[%c6] : memref<8xi32, #tpu.memory_space<smem>>
    %22 = arith.index_cast %21 : i32 to index
    %c0_9 = arith.constant 0 : index
    %23 = vector.load %arg2[%22, %c0_9] : memref<81x128xf32, #tpu.memory_space<vmem>>, vector<1x128xf32>
    %c7 = arith.constant 7 : index
    %24 = memref.load %arg1[%c7] : memref<8xi32, #tpu.memory_space<smem>>
    %25 = arith.index_cast %24 : i32 to index
    %c0_10 = arith.constant 0 : index
    %26 = vector.load %arg2[%25, %c0_10] : memref<81x128xf32, #tpu.memory_space<vmem>>, vector<1x128xf32>
    %cst = arith.constant 0.000000e+00 : f32
    %27 = vector.broadcast %cst : f32 to vector<1x32xf32>
    %cst_11 = arith.constant 0.000000e+00 : f32
    %28 = vector.broadcast %cst_11 : f32 to vector<1x32xf32>
    %cst_12 = arith.constant dense<0.000000e+00> : vector<1x128xf32>
    %29 = tpu.matmul %27, %0, %cst_12 {dimension_numbers = #tpu.dot_dimension_numbers<[1], [0], [0], [1], [0, 0, 1, 1], [], []>} : vector<1x32xf32>, vector<32x128xf32>, vector<1x128xf32> -> vector<1x128xf32>
    %30 = arith.addf %5, %29 : vector<1x128xf32>
    %31 = arith.negf %30 : vector<1x128xf32>
    %32 = math.exp %31 : vector<1x128xf32>
    %cst_13 = arith.constant 1.000000e+00 : f32
    %33 = vector.broadcast %cst_13 : f32 to vector<1x128xf32>
    %34 = arith.addf %33, %32 : vector<1x128xf32>
    %35 = arith.divf %33, %34 : vector<1x128xf32>
    %36 = vector.extract_strided_slice %35 {offsets = [0, 0], sizes = [1, 32], strides = [1, 1]} : vector<1x128xf32> to vector<1x32xf32>
    %37 = vector.extract_strided_slice %35 {offsets = [0, 32], sizes = [1, 32], strides = [1, 1]} : vector<1x128xf32> to vector<1x32xf32>
    %38 = vector.extract_strided_slice %35 {offsets = [0, 64], sizes = [1, 32], strides = [1, 1]} : vector<1x128xf32> to vector<1x32xf32>
    %cst_14 = arith.constant 2.000000e+00 : f32
    %39 = vector.broadcast %cst_14 : f32 to vector<1x32xf32>
    %40 = arith.mulf %39, %38 : vector<1x32xf32>
    %cst_15 = arith.constant 1.000000e+00 : f32
    %41 = vector.broadcast %cst_15 : f32 to vector<1x32xf32>
    %42 = arith.subf %40, %41 : vector<1x32xf32>
    %43 = vector.extract_strided_slice %35 {offsets = [0, 96], sizes = [1, 32], strides = [1, 1]} : vector<1x128xf32> to vector<1x32xf32>
    %44 = arith.mulf %37, %28 : vector<1x32xf32>
    %45 = arith.mulf %36, %42 : vector<1x32xf32>
    %46 = arith.addf %44, %45 : vector<1x32xf32>
    %47 = math.tanh %46 : vector<1x32xf32>
    %48 = arith.mulf %43, %47 : vector<1x32xf32>
    %cst_16 = arith.constant dense<0.000000e+00> : vector<1x128xf32>
    %49 = tpu.matmul %48, %0, %cst_16 {dimension_numbers = #tpu.dot_dimension_numbers<[1], [0], [0], [1], [0, 0, 1, 1], [], []>} : vector<1x32xf32>, vector<32x128xf32>, vector<1x128xf32> -> vector<1x128xf32>
    %50 = arith.addf %8, %49 : vector<1x128xf32>
    %51 = arith.negf %50 : vector<1x128xf32>
    %52 = math.exp %51 : vector<1x128xf32>
    %cst_17 = arith.constant 1.000000e+00 : f32
    %53 = vector.broadcast %cst_17 : f32 to vector<1x128xf32>
    %54 = arith.addf %53, %52 : vector<1x128xf32>
    %55 = arith.divf %53, %54 : vector<1x128xf32>
    %56 = vector.extract_strided_slice %55 {offsets = [0, 0], sizes = [1, 32], strides = [1, 1]} : vector<1x128xf32> to vector<1x32xf32>
    %57 = vector.extract_strided_slice %55 {offsets = [0, 32], sizes = [1, 32], strides = [1, 1]} : vector<1x128xf32> to vector<1x32xf32>
    %58 = vector.extract_strided_slice %55 {offsets = [0, 64], sizes = [1, 32], strides = [1, 1]} : vector<1x128xf32> to vector<1x32xf32>
    %cst_18 = arith.constant 2.000000e+00 : f32
    %59 = vector.broadcast %cst_18 : f32 to vector<1x32xf32>
    %60 = arith.mulf %59, %58 : vector<1x32xf32>
    %cst_19 = arith.constant 1.000000e+00 : f32
    %61 = vector.broadcast %cst_19 : f32 to vector<1x32xf32>
    %62 = arith.subf %60, %61 : vector<1x32xf32>
    %63 = vector.extract_strided_slice %55 {offsets = [0, 96], sizes = [1, 32], strides = [1, 1]} : vector<1x128xf32> to vector<1x32xf32>
    %64 = arith.mulf %57, %46 : vector<1x32xf32>
    %65 = arith.mulf %56, %62 : vector<1x32xf32>
    %66 = arith.addf %64, %65 : vector<1x32xf32>
    %67 = math.tanh %66 : vector<1x32xf32>
    %68 = arith.mulf %63, %67 : vector<1x32xf32>
    %cst_20 = arith.constant dense<0.000000e+00> : vector<1x128xf32>
    %69 = tpu.matmul %68, %0, %cst_20 {dimension_numbers = #tpu.dot_dimension_numbers<[1], [0], [0], [1], [0, 0, 1, 1], [], []>} : vector<1x32xf32>, vector<32x128xf32>, vector<1x128xf32> -> vector<1x128xf32>
    %70 = arith.addf %11, %69 : vector<1x128xf32>
    %71 = arith.negf %70 : vector<1x128xf32>
    %72 = math.exp %71 : vector<1x128xf32>
    %cst_21 = arith.constant 1.000000e+00 : f32
    %73 = vector.broadcast %cst_21 : f32 to vector<1x128xf32>
    %74 = arith.addf %73, %72 : vector<1x128xf32>
    %75 = arith.divf %73, %74 : vector<1x128xf32>
    %76 = vector.extract_strided_slice %75 {offsets = [0, 0], sizes = [1, 32], strides = [1, 1]} : vector<1x128xf32> to vector<1x32xf32>
    %77 = vector.extract_strided_slice %75 {offsets = [0, 32], sizes = [1, 32], strides = [1, 1]} : vector<1x128xf32> to vector<1x32xf32>
    %78 = vector.extract_strided_slice %75 {offsets = [0, 64], sizes = [1, 32], strides = [1, 1]} : vector<1x128xf32> to vector<1x32xf32>
    %cst_22 = arith.constant 2.000000e+00 : f32
    %79 = vector.broadcast %cst_22 : f32 to vector<1x32xf32>
    %80 = arith.mulf %79, %78 : vector<1x32xf32>
    %cst_23 = arith.constant 1.000000e+00 : f32
    %81 = vector.broadcast %cst_23 : f32 to vector<1x32xf32>
    %82 = arith.subf %80, %81 : vector<1x32xf32>
    %83 = vector.extract_strided_slice %75 {offsets = [0, 96], sizes = [1, 32], strides = [1, 1]} : vector<1x128xf32> to vector<1x32xf32>
    %84 = arith.mulf %77, %66 : vector<1x32xf32>
    %85 = arith.mulf %76, %82 : vector<1x32xf32>
    %86 = arith.addf %84, %85 : vector<1x32xf32>
    %87 = math.tanh %86 : vector<1x32xf32>
    %88 = arith.mulf %83, %87 : vector<1x32xf32>
    %cst_24 = arith.constant dense<0.000000e+00> : vector<1x128xf32>
    %89 = tpu.matmul %88, %0, %cst_24 {dimension_numbers = #tpu.dot_dimension_numbers<[1], [0], [0], [1], [0, 0, 1, 1], [], []>} : vector<1x32xf32>, vector<32x128xf32>, vector<1x128xf32> -> vector<1x128xf32>
    %90 = arith.addf %14, %89 : vector<1x128xf32>
    %91 = arith.negf %90 : vector<1x128xf32>
    %92 = math.exp %91 : vector<1x128xf32>
    %cst_25 = arith.constant 1.000000e+00 : f32
    %93 = vector.broadcast %cst_25 : f32 to vector<1x128xf32>
    %94 = arith.addf %93, %92 : vector<1x128xf32>
    %95 = arith.divf %93, %94 : vector<1x128xf32>
    %96 = vector.extract_strided_slice %95 {offsets = [0, 0], sizes = [1, 32], strides = [1, 1]} : vector<1x128xf32> to vector<1x32xf32>
    %97 = vector.extract_strided_slice %95 {offsets = [0, 32], sizes = [1, 32], strides = [1, 1]} : vector<1x128xf32> to vector<1x32xf32>
    %98 = vector.extract_strided_slice %95 {offsets = [0, 64], sizes = [1, 32], strides = [1, 1]} : vector<1x128xf32> to vector<1x32xf32>
    %cst_26 = arith.constant 2.000000e+00 : f32
    %99 = vector.broadcast %cst_26 : f32 to vector<1x32xf32>
    %100 = arith.mulf %99, %98 : vector<1x32xf32>
    %cst_27 = arith.constant 1.000000e+00 : f32
    %101 = vector.broadcast %cst_27 : f32 to vector<1x32xf32>
    %102 = arith.subf %100, %101 : vector<1x32xf32>
    %103 = vector.extract_strided_slice %95 {offsets = [0, 96], sizes = [1, 32], strides = [1, 1]} : vector<1x128xf32> to vector<1x32xf32>
    %104 = arith.mulf %97, %86 : vector<1x32xf32>
    %105 = arith.mulf %96, %102 : vector<1x32xf32>
    %106 = arith.addf %104, %105 : vector<1x32xf32>
    %107 = math.tanh %106 : vector<1x32xf32>
    %108 = arith.mulf %103, %107 : vector<1x32xf32>
    %cst_28 = arith.constant dense<0.000000e+00> : vector<1x128xf32>
    %109 = tpu.matmul %108, %0, %cst_28 {dimension_numbers = #tpu.dot_dimension_numbers<[1], [0], [0], [1], [0, 0, 1, 1], [], []>} : vector<1x32xf32>, vector<32x128xf32>, vector<1x128xf32> -> vector<1x128xf32>
    %110 = arith.addf %17, %109 : vector<1x128xf32>
    %111 = arith.negf %110 : vector<1x128xf32>
    %112 = math.exp %111 : vector<1x128xf32>
    %cst_29 = arith.constant 1.000000e+00 : f32
    %113 = vector.broadcast %cst_29 : f32 to vector<1x128xf32>
    %114 = arith.addf %113, %112 : vector<1x128xf32>
    %115 = arith.divf %113, %114 : vector<1x128xf32>
    %116 = vector.extract_strided_slice %115 {offsets = [0, 0], sizes = [1, 32], strides = [1, 1]} : vector<1x128xf32> to vector<1x32xf32>
    %117 = vector.extract_strided_slice %115 {offsets = [0, 32], sizes = [1, 32], strides = [1, 1]} : vector<1x128xf32> to vector<1x32xf32>
    %118 = vector.extract_strided_slice %115 {offsets = [0, 64], sizes = [1, 32], strides = [1, 1]} : vector<1x128xf32> to vector<1x32xf32>
    %cst_30 = arith.constant 2.000000e+00 : f32
    %119 = vector.broadcast %cst_30 : f32 to vector<1x32xf32>
    %120 = arith.mulf %119, %118 : vector<1x32xf32>
    %cst_31 = arith.constant 1.000000e+00 : f32
    %121 = vector.broadcast %cst_31 : f32 to vector<1x32xf32>
    %122 = arith.subf %120, %121 : vector<1x32xf32>
    %123 = vector.extract_strided_slice %115 {offsets = [0, 96], sizes = [1, 32], strides = [1, 1]} : vector<1x128xf32> to vector<1x32xf32>
    %124 = arith.mulf %117, %106 : vector<1x32xf32>
    %125 = arith.mulf %116, %122 : vector<1x32xf32>
    %126 = arith.addf %124, %125 : vector<1x32xf32>
    %127 = math.tanh %126 : vector<1x32xf32>
    %128 = arith.mulf %123, %127 : vector<1x32xf32>
    %cst_32 = arith.constant dense<0.000000e+00> : vector<1x128xf32>
    %129 = tpu.matmul %128, %0, %cst_32 {dimension_numbers = #tpu.dot_dimension_numbers<[1], [0], [0], [1], [0, 0, 1, 1], [], []>} : vector<1x32xf32>, vector<32x128xf32>, vector<1x128xf32> -> vector<1x128xf32>
    %130 = arith.addf %20, %129 : vector<1x128xf32>
    %131 = arith.negf %130 : vector<1x128xf32>
    %132 = math.exp %131 : vector<1x128xf32>
    %cst_33 = arith.constant 1.000000e+00 : f32
    %133 = vector.broadcast %cst_33 : f32 to vector<1x128xf32>
    %134 = arith.addf %133, %132 : vector<1x128xf32>
    %135 = arith.divf %133, %134 : vector<1x128xf32>
    %136 = vector.extract_strided_slice %135 {offsets = [0, 0], sizes = [1, 32], strides = [1, 1]} : vector<1x128xf32> to vector<1x32xf32>
    %137 = vector.extract_strided_slice %135 {offsets = [0, 32], sizes = [1, 32], strides = [1, 1]} : vector<1x128xf32> to vector<1x32xf32>
    %138 = vector.extract_strided_slice %135 {offsets = [0, 64], sizes = [1, 32], strides = [1, 1]} : vector<1x128xf32> to vector<1x32xf32>
    %cst_34 = arith.constant 2.000000e+00 : f32
    %139 = vector.broadcast %cst_34 : f32 to vector<1x32xf32>
    %140 = arith.mulf %139, %138 : vector<1x32xf32>
    %cst_35 = arith.constant 1.000000e+00 : f32
    %141 = vector.broadcast %cst_35 : f32 to vector<1x32xf32>
    %142 = arith.subf %140, %141 : vector<1x32xf32>
    %143 = vector.extract_strided_slice %135 {offsets = [0, 96], sizes = [1, 32], strides = [1, 1]} : vector<1x128xf32> to vector<1x32xf32>
    %144 = arith.mulf %137, %126 : vector<1x32xf32>
    %145 = arith.mulf %136, %142 : vector<1x32xf32>
    %146 = arith.addf %144, %145 : vector<1x32xf32>
    %147 = math.tanh %146 : vector<1x32xf32>
    %148 = arith.mulf %143, %147 : vector<1x32xf32>
    %cst_36 = arith.constant dense<0.000000e+00> : vector<1x128xf32>
    %149 = tpu.matmul %148, %0, %cst_36 {dimension_numbers = #tpu.dot_dimension_numbers<[1], [0], [0], [1], [0, 0, 1, 1], [], []>} : vector<1x32xf32>, vector<32x128xf32>, vector<1x128xf32> -> vector<1x128xf32>
    %150 = arith.addf %23, %149 : vector<1x128xf32>
    %151 = arith.negf %150 : vector<1x128xf32>
    %152 = math.exp %151 : vector<1x128xf32>
    %cst_37 = arith.constant 1.000000e+00 : f32
    %153 = vector.broadcast %cst_37 : f32 to vector<1x128xf32>
    %154 = arith.addf %153, %152 : vector<1x128xf32>
    %155 = arith.divf %153, %154 : vector<1x128xf32>
    %156 = vector.extract_strided_slice %155 {offsets = [0, 0], sizes = [1, 32], strides = [1, 1]} : vector<1x128xf32> to vector<1x32xf32>
    %157 = vector.extract_strided_slice %155 {offsets = [0, 32], sizes = [1, 32], strides = [1, 1]} : vector<1x128xf32> to vector<1x32xf32>
    %158 = vector.extract_strided_slice %155 {offsets = [0, 64], sizes = [1, 32], strides = [1, 1]} : vector<1x128xf32> to vector<1x32xf32>
    %cst_38 = arith.constant 2.000000e+00 : f32
    %159 = vector.broadcast %cst_38 : f32 to vector<1x32xf32>
    %160 = arith.mulf %159, %158 : vector<1x32xf32>
    %cst_39 = arith.constant 1.000000e+00 : f32
    %161 = vector.broadcast %cst_39 : f32 to vector<1x32xf32>
    %162 = arith.subf %160, %161 : vector<1x32xf32>
    %163 = vector.extract_strided_slice %155 {offsets = [0, 96], sizes = [1, 32], strides = [1, 1]} : vector<1x128xf32> to vector<1x32xf32>
    %164 = arith.mulf %157, %146 : vector<1x32xf32>
    %165 = arith.mulf %156, %162 : vector<1x32xf32>
    %166 = arith.addf %164, %165 : vector<1x32xf32>
    %167 = math.tanh %166 : vector<1x32xf32>
    %168 = arith.mulf %163, %167 : vector<1x32xf32>
    %cst_40 = arith.constant dense<0.000000e+00> : vector<1x128xf32>
    %169 = tpu.matmul %168, %0, %cst_40 {dimension_numbers = #tpu.dot_dimension_numbers<[1], [0], [0], [1], [0, 0, 1, 1], [], []>} : vector<1x32xf32>, vector<32x128xf32>, vector<1x128xf32> -> vector<1x128xf32>
    %170 = arith.addf %26, %169 : vector<1x128xf32>
    %171 = arith.negf %170 : vector<1x128xf32>
    %172 = math.exp %171 : vector<1x128xf32>
    %cst_41 = arith.constant 1.000000e+00 : f32
    %173 = vector.broadcast %cst_41 : f32 to vector<1x128xf32>
    %174 = arith.addf %173, %172 : vector<1x128xf32>
    %175 = arith.divf %173, %174 : vector<1x128xf32>
    %176 = vector.extract_strided_slice %175 {offsets = [0, 0], sizes = [1, 32], strides = [1, 1]} : vector<1x128xf32> to vector<1x32xf32>
    %177 = vector.extract_strided_slice %175 {offsets = [0, 32], sizes = [1, 32], strides = [1, 1]} : vector<1x128xf32> to vector<1x32xf32>
    %178 = vector.extract_strided_slice %175 {offsets = [0, 64], sizes = [1, 32], strides = [1, 1]} : vector<1x128xf32> to vector<1x32xf32>
    %cst_42 = arith.constant 2.000000e+00 : f32
    %179 = vector.broadcast %cst_42 : f32 to vector<1x32xf32>
    %180 = arith.mulf %179, %178 : vector<1x32xf32>
    %cst_43 = arith.constant 1.000000e+00 : f32
    %181 = vector.broadcast %cst_43 : f32 to vector<1x32xf32>
    %182 = arith.subf %180, %181 : vector<1x32xf32>
    %183 = vector.extract_strided_slice %175 {offsets = [0, 96], sizes = [1, 32], strides = [1, 1]} : vector<1x128xf32> to vector<1x32xf32>
    %184 = arith.mulf %177, %166 : vector<1x32xf32>
    %185 = arith.mulf %176, %182 : vector<1x32xf32>
    %186 = arith.addf %184, %185 : vector<1x32xf32>
    %187 = math.tanh %186 : vector<1x32xf32>
    %188 = arith.mulf %183, %187 : vector<1x32xf32>
    %189 = tpu.concatenate %48, %68, %88, %108, %128, %148, %168, %188 in 0 : vector<1x32xf32>, vector<1x32xf32>, vector<1x32xf32>, vector<1x32xf32>, vector<1x32xf32>, vector<1x32xf32>, vector<1x32xf32>, vector<1x32xf32> -> vector<8x32xf32>
    %cst_44 = arith.constant dense<0.000000e+00> : vector<8x128xf32>
    %190 = tpu.matmul %189, %1, %cst_44 {dimension_numbers = #tpu.dot_dimension_numbers<[1], [0], [0], [1], [0, 0, 1, 1], [], []>} : vector<8x32xf32>, vector<32x128xf32>, vector<8x128xf32> -> vector<8x128xf32>
    %191 = vector.broadcast %2 : vector<1x128xf32> to vector<8x128xf32>
    %192 = arith.addf %190, %191 : vector<8x128xf32>
    %cst_45 = arith.constant dense<0xFF800000> : vector<8xf32>
    %193 = vector.multi_reduction <maximumf>, %192, %cst_45 [1] : vector<8x128xf32> to vector<8xf32>
    %194 = vector.shape_cast %193 : vector<8xf32> to vector<8x1xf32>
    %195 = vector.broadcast %194 : vector<8x1xf32> to vector<8x128xf32>
    %196 = arith.subf %192, %195 : vector<8x128xf32>
    %197 = math.exp %196 : vector<8x128xf32>
    %cst_46 = arith.constant dense<0.000000e+00> : vector<8xf32>
    %198 = vector.multi_reduction <add>, %197, %cst_46 [1] : vector<8x128xf32> to vector<8xf32>
    %199 = vector.shape_cast %198 : vector<8xf32> to vector<8x1xf32>
    %200 = math.log %199 : vector<8x1xf32>
    %201 = arith.addf %200, %194 : vector<8x1xf32>
    %202 = vector.broadcast %201 : vector<8x1xf32> to vector<8x128xf32>
    %203 = arith.subf %192, %202 : vector<8x128xf32>
    %c0_47 = arith.constant 0 : index
    %c0_48 = arith.constant 0 : index
    %204 = vector.load %arg3[%c0_47, %c0_48] : memref<8x128xf32, #tpu.memory_space<vmem>>, vector<8x128xf32>
    tpu.vector_store %arg3[%c0_47, %c0_48], %203 {strides = array<i32>} : memref<8x128xf32, #tpu.memory_space<vmem>>, vector<8x128xf32>,
    return
  }
  func.func @transform_0(%arg0: i32, %arg1: memref<8xi32, #tpu.memory_space<smem>>) -> (i32, i32) {
    %c0_i32 = arith.constant 0 : i32
    %c0_i32_0 = arith.constant 0 : i32
    %c0_i32_1 = arith.constant 0 : i32
    return %c0_i32, %c0_i32_0 : i32, i32
  }
  func.func @transform_1(%arg0: i32, %arg1: memref<8xi32, #tpu.memory_space<smem>>) -> (i32, i32) {
    %c0_i32 = arith.constant 0 : i32
    %c0_i32_0 = arith.constant 0 : i32
    %c0_i32_1 = arith.constant 0 : i32
    return %c0_i32, %c0_i32_0 : i32, i32
  }
}

</mosaic_0001>

<bundles_post_ra>
// kernel: forward.1
= control target key start
LH: loop header
LB: loop body
LE: loop exit
PB: predicated region body
PF: predicated region fallthrough
CT: control target
= control target key end

     0   :  { %s828_s12 = smov [#allocation3]   ;;  %s904_s0 = inlined_call_operand.hbm [shape: s32[8], index: 0, kind: input, shape index: {}]   ;;  %s905_s1 = inlined_call_operand.hbm [shape: f32[81,128], index: 1, kind: input, shape index: {}]   ;;  %s906_s2 = inlined_call_operand.hbm [shape: f32[8,128], index: 2, kind: output, shape index: {}]  }
   0x1   :  { %s8_s11 = sshll.u32 %s904_s0, 4  ;;  %s9_s11 = int_to_ptr.hbm [resolvable:$true] %s8_s11 }
   0x2   :  { %11 = dma.hbm_to_smem %s9_s11, 16, %s828_s12, [#allocation2] }
   0x3   :  { %822 = dma.done.wait [#allocation2], 16 }
   0x4   :  { %823 = vsyncadd [#allocation2], 4294967280 }
   0x5   :  { %14 = sfence }
   0x6   :  { %15 = vsyncpa [#allocation5], 0 }
   0x7   :  { %16 = vsyncpa [#allocation6], 0  ;;  %s21_s15 = sshll.u32 %s905_s1, 4  ;;  %s829_s16 = smov [#allocation4]   ;;  %s22_s15 = int_to_ptr.hbm [resolvable:$true] %s21_s15 }
   0x8   :  { %s23_s17 = sshll.u32 %s829_s16, 4  ;;  %s830_s18 = smov 128   ;;  %s24_s17 = int_to_ptr.vmem [resolvable:$true] %s23_s17 }
   0x9   :  { %s831_s19 = smov 8  }
   0xa   :  { %29 = dma.hbm_to_vmem [thread:$0]  %s22_s15, 1408, %s24_s17, [#allocation5], %s830_s18, %s830_s18, %s831_s19  }
   0xb   :  { %824 = dma.done.wait [#allocation5], 1408  }
   0xc   :  { %825 = vsyncadd [#allocation5], 4294965888  ;;  %v37_v0 = vld [vmem:[#allocation4 + $0x28] sm:$0xff]  ;;  %v36_v1 = vld [vmem:[#allocation4 + $0x20] sm:$0xff]  ;;  %v832_v4 = vmov 0.0   ;;  %s43_s0 = sld [smem:[#allocation3]] }
   0xd   :  { %83 = vmatpush.msra.mxu0 %v37_v0  ;;  %147 = vmatpush.msra.mxu1 %v37_v0  ;;  %v35_v2 = vld [vmem:[#allocation4 + $0x18] sm:$0xff]  ;;  %v34_v3 = vld [vmem:[#allocation4 + $0x10] sm:$0xff]  ;;  %s833_s20 = smov 64   ;;  %s834_s21 = smov 32   ;;  %vm67_vm4 = vcmask 261120   ;;  %vm593_vm13 = vcmask 1040384  }
   0xe   :  { %211 = vmatpush.msra.mxu2 %v37_v0  ;;  %275 = vmatpush.msra.mxu3 %v37_v0  ;;  %s670_s22 = sld [smem:[#allocation3 + $0x1]]  ;;  %vm595_vm14 = vcmask 1041408   ;;  %s835_s8 = smov [#allocation7]  }
   0xf   :  { %84 = vmatpush.msra.mxu0 %v36_v1  ;;  %148 = vmatpush.msra.mxu1 %v36_v1  ;;  %s671_s24 = sld [smem:[#allocation3 + $0x2]]  ;;  %s650_s9 = sshll.u32 %s835_s8, 4  ;;  %s651_s9 = int_to_ptr.vmem [resolvable:$true] %s650_s9 }
  0x10   :  { %212 = vmatpush.msra.mxu2 %v36_v1  ;;  %276 = vmatpush.msra.mxu3 %v36_v1  ;;  %s672_s26 = sld [smem:[#allocation3 + $0x3]]  ;;  %s652_s12 = sshll.u32 %s906_s2, 4  ;;  %s653_s12 = int_to_ptr.hbm [resolvable:$true] %s652_s12 }
  0x11   :  { %85 = vmatpush.msra.mxu0 %v35_v2  ;;  %149 = vmatpush.msra.mxu1 %v35_v2  ;;  %s673_s28 = sld [smem:[#allocation3 + $0x4]] }
  0x12   :  { %213 = vmatpush.msra.mxu2 %v35_v2  ;;  %277 = vmatpush.msra.mxu3 %v35_v2  ;;  %s44_s1 = scalar_lea.vmem [#allocation4], %s43_s0  ;;  %s674_s30 = sld [smem:[#allocation3 + $0x5]] }
  0x13   :  { %86 = vmatpush.msra.mxu0 %v34_v3  ;;  %150 = vmatpush.msra.mxu1 %v34_v3  ;;  %v45_v5 = vld [vmem:[%s44_s1] sm:$0x1]  ;;  %s675_s4 = sld [smem:[#allocation3 + $0x6]] }
  0x14   :  { %87 = vmatmul.f32.vlgmr.msra.gmra.mxu0 %v832_v4  ;;  %214 = vmatpush.msra.mxu2 %v34_v3  ;;  %s47_s23 = scalar_lea.vmem [#allocation4], %s670_s22  ;;  %s676_s6 = sld [smem:[#allocation3 + $0x7]] }
  0x15   :  { %278 = vmatpush.msra.mxu3 %v34_v3  ;;  %339 = vmatpush.msrb.mxu0 %v37_v0  ;;  %v48_v32 = vld [vmem:[%s47_s23] sm:$0x1]  ;;  %s50_s25 = scalar_lea.vmem [#allocation4], %s671_s24 }
  0x16   :  { %403 = vmatpush.msrb.mxu1 %v37_v0  ;;  %467 = vmatpush.msrb.mxu2 %v37_v0  ;;  %v51_v59 = vld [vmem:[%s50_s25] sm:$0x1]  ;;  %s53_s27 = scalar_lea.vmem [#allocation4], %s672_s26 }
  0x17   :  { %340 = vmatpush.msrb.mxu0 %v36_v1  ;;  %531 = vmatpush.msrb.mxu3 %v37_v0  ;;  %s56_s29 = scalar_lea.vmem [#allocation4], %s673_s28 }
  0x18   :  { %404 = vmatpush.msrb.mxu1 %v36_v1  ;;  %468 = vmatpush.msrb.mxu2 %v36_v1  ;;  %s59_s3 = scalar_lea.vmem [#allocation4], %s674_s30 }
  0x19   :  { %341 = vmatpush.msrb.mxu0 %v35_v2  ;;  %532 = vmatpush.msrb.mxu3 %v36_v1  ;;  %s62_s5 = scalar_lea.vmem [#allocation4], %s675_s4 }
  0x1a   :  { %405 = vmatpush.msrb.mxu1 %v35_v2  ;;  %469 = vmatpush.msrb.mxu2 %v35_v2  ;;  %s65_s7 = scalar_lea.vmem [#allocation4], %s676_s6 }
  0x1b   :  { %342 = vmatpush.msrb.mxu0 %v34_v3  ;;  %533 = vmatpush.msrb.mxu3 %v35_v2 }
  0x1c   :  { %406 = vmatpush.msrb.mxu1 %v34_v3  ;;  %470 = vmatpush.msrb.mxu2 %v34_v3 }
  0x1d   :  { %534 = vmatpush.msrb.mxu3 %v34_v3 }
  0x91   :  { %v88_v6 = vpop.f32.mrf.mxu0 }
  0x92   :  { %v91_v7 = vadd.f32 %v88_v6, %v45_v5 }
  0x94   :  { %v677_v8 = vmul.f32 -1.442695, %v91_v7 }
  0x96   :  { %710 = vpow2.f32 %v677_v8 }
  0x9c   :  { %v711_v9 = vpop.eup %710 }
  0x9d   :  { %v95_v10 = vadd.f32 1.0, %v711_v9 }
  0x9f   :  { %712 = vrcp.f32 %v95_v10  ;;  %v107_v14 = vand.u32 2147483648, %v95_v10  ;;  %v105_v16 = vand.u32 2147483647, %v95_v10  ;;  %vm101_vm1 = vweird.f32 %v95_v10 }
  0xa1   :  { %v108_v18 = vor.u32 1.1754944e-38, %v107_v14  ;;  %vm106_vm3 = vcmp.eq.f32.partialorder %v105_v16, 8.507059e+37 }
  0xa5   :  { %v713_v11 = vpop.eup %712 }
  0xa6   :  { %v97_v12 = vmul.f32 %v713_v11, %v95_v10  ;;  %vm102_vm0 = vweird.f32 %v713_v11 }
  0xa7   :  { %vm103_vm2 = vmor %vm101_vm1, %vm102_vm0 }
  0xa8   :  { %v98_v13 = vsub.f32 1.0, %v97_v12 }
  0xaa   :  { %v99_v15 = vmul.f32 %v713_v11, %v98_v13 }
  0xac   :  { %v100_v17 = vadd.f32 %v713_v11, %v99_v15 }
  0xae   :  { %v104_v19 = vsel %vm103_vm2, %v713_v11, %v100_v17 }
  0xaf   :  { %v109_v20 = vsel %vm106_vm3, %v108_v18, %v104_v19  ;;  %vm597_vm3 = vcmask 1042432  }
  0xb0   :  { %v111_v21 = vmul.f32 2.0, %v109_v20  ;;  %v113_v25 = vmul.f32 0.0, %v109_v20 }
  0xb2   :  { %v678_v22 = vadd.f32 -1.0, %v111_v21 }
  0xb4   :  { %115 = vrot.lane.b32.xlu0 %v678_v22, %s833_s20 }
 0x126   :  { %v116_v23 = vpop.permute.xlu0 %115 }
 0x127   :  { %v118_v24 = vmul.f32 %v116_v23, %v109_v20 }
 0x129   :  { %120 = vrot.lane.b32.xlu0 %v118_v24, %s834_s21 }
 0x19b   :  { %v121_v26 = vpop.permute.xlu0 %120 }
 0x19c   :  { %v123_v27 = vadd.f32 %v121_v26, %v113_v25  ;;  %v54_v26 = vld [vmem:[%s53_s27] sm:$0x1] }
 0x19e   :  { %714 = vtanh.f32 %v123_v27 }
 0x1a4   :  { %v715_v28 = vpop.eup %714 }
 0x1a5   :  { %126 = vrot.lane.b32.xlu1 %v715_v28, %s833_s20 }
 0x217   :  { %v127_v29 = vpop.permute.xlu1 %126 }
 0x218   :  { %v860_v30 = vmul.f32 %v127_v29, %v109_v20 }
 0x21a   :  { %131 = vrot.lane.b32.xlu1 %v860_v30, %s834_s21 }
 0x28c   :  { %v132_v31 = vpop.permute.xlu1 %131 }
 0x28d   :  { %679 = vmatmul.msk.f32.vlgmr.msra.gmra.mxu1 %vm67_vm4, %v132_v31 }
 0x30a   :  { %v152_v33 = vpop.f32.mrf.mxu1 }
 0x30b   :  { %v155_v34 = vadd.f32 %v152_v33, %v48_v32 }
 0x30d   :  { %v680_v35 = vmul.f32 -1.442695, %v155_v34 }
 0x30f   :  { %716 = vpow2.f32 %v680_v35 }
 0x315   :  { %v717_v36 = vpop.eup %716 }
 0x316   :  { %v159_v37 = vadd.f32 1.0, %v717_v36 }
 0x318   :  { %718 = vrcp.f32 %v159_v37  ;;  %v171_v41 = vand.u32 2147483648, %v159_v37  ;;  %v169_v43 = vand.u32 2147483647, %v159_v37  ;;  %vm165_vm6 = vweird.f32 %v159_v37 }
 0x31a   :  { %v172_v45 = vor.u32 1.1754944e-38, %v171_v41  ;;  %vm170_vm8 = vcmp.eq.f32.partialorder %v169_v43, 8.507059e+37 }
 0x31e   :  { %v719_v38 = vpop.eup %718 }
 0x31f   :  { %v161_v39 = vmul.f32 %v719_v38, %v159_v37  ;;  %vm166_vm5 = vweird.f32 %v719_v38 }
 0x320   :  { %vm167_vm7 = vmor %vm165_vm6, %vm166_vm5 }
 0x321   :  { %v162_v40 = vsub.f32 1.0, %v161_v39 }
 0x323   :  { %v163_v42 = vmul.f32 %v719_v38, %v162_v40 }
 0x325   :  { %v164_v44 = vadd.f32 %v719_v38, %v163_v42 }
 0x327   :  { %v168_v46 = vsel %vm167_vm7, %v719_v38, %v164_v44 }
 0x328   :  { %v173_v47 = vsel %vm170_vm8, %v172_v45, %v168_v46 }
 0x329   :  { %v175_v48 = vmul.f32 2.0, %v173_v47  ;;  %v177_v52 = vmul.f32 %v173_v47, %v123_v27 }
 0x32b   :  { %v681_v49 = vadd.f32 -1.0, %v175_v48 }
 0x32d   :  { %179 = vrot.lane.b32.xlu2 %v681_v49, %s833_s20 }
 0x387   :  { %v180_v50 = vpop.permute.xlu2 %179 }
 0x388   :  { %v182_v51 = vmul.f32 %v180_v50, %v173_v47 }
 0x38a   :  { %184 = vrot.lane.b32.xlu2 %v182_v51, %s834_s21 }
 0x3e4   :  { %v185_v53 = vpop.permute.xlu2 %184 }
 0x3e5   :  { %v187_v54 = vadd.f32 %v185_v53, %v177_v52 }
 0x3e7   :  { %720 = vtanh.f32 %v187_v54 }
 0x3ed   :  { %v721_v55 = vpop.eup %720 }
 0x3ee   :  { %190 = vrot.lane.b32.xlu0 %v721_v55, %s833_s20  ;;  %v57_v55 = vld [vmem:[%s56_s29] sm:$0x1] }
 0x460   :  { %v191_v56 = vpop.permute.xlu0 %190 }
 0x461   :  { %v193_v57 = vmul.f32 %v191_v56, %v173_v47 }
 0x463   :  { %195 = vrot.lane.b32.xlu1 %v193_v57, %s834_s21  ;;  %v578_v19 = vrot.slane %v193_v57, 7 }
 0x465   :  { %v594_v23 = vsel %vm593_vm13, %v860_v30, %v578_v19 }
 0x4d5   :  { %v196_v58 = vpop.permute.xlu1 %195 }
 0x4d6   :  { %682 = vmatmul.msk.f32.vlgmr.msra.gmra.mxu2 %vm67_vm4, %v196_v58 }
 0x559   :  { %v216_v60 = vpop.f32.mrf.mxu2 }
 0x55a   :  { %v219_v61 = vadd.f32 %v216_v60, %v51_v59 }
 0x55c   :  { %v683_v62 = vmul.f32 -1.442695, %v219_v61 }
 0x55e   :  { %722 = vpow2.f32 %v683_v62 }
 0x564   :  { %v723_v63 = vpop.eup %722 }
 0x565   :  { %v223_v0 = vadd.f32 1.0, %v723_v63 }
 0x567   :  { %724 = vrcp.f32 %v223_v0  ;;  %v235_v4 = vand.u32 2147483648, %v223_v0  ;;  %v233_v6 = vand.u32 2147483647, %v223_v0  ;;  %vm229_vm10 = vweird.f32 %v223_v0 }
 0x569   :  { %v236_v8 = vor.u32 1.1754944e-38, %v235_v4  ;;  %vm234_vm12 = vcmp.eq.f32.partialorder %v233_v6, 8.507059e+37 }
 0x56d   :  { %v725_v1 = vpop.eup %724 }
 0x56e   :  { %v225_v2 = vmul.f32 %v725_v1, %v223_v0  ;;  %vm230_vm9 = vweird.f32 %v725_v1 }
 0x56f   :  { %vm231_vm11 = vmor %vm229_vm10, %vm230_vm9  ;;  %vm599_vm9 = vcmask 1043456  }
 0x570   :  { %v226_v3 = vsub.f32 1.0, %v225_v2 }
 0x572   :  { %v227_v5 = vmul.f32 %v725_v1, %v226_v3 }
 0x574   :  { %v228_v7 = vadd.f32 %v725_v1, %v227_v5 }
 0x576   :  { %v232_v9 = vsel %vm231_vm11, %v725_v1, %v228_v7 }
 0x577   :  { %v237_v10 = vsel %vm234_vm12, %v236_v8, %v232_v9 }
 0x578   :  { %v239_v11 = vmul.f32 2.0, %v237_v10  ;;  %v241_v15 = vmul.f32 %v237_v10, %v187_v54 }
 0x57a   :  { %v684_v12 = vadd.f32 -1.0, %v239_v11 }
 0x57c   :  { %243 = vrot.lane.b32.xlu2 %v684_v12, %s833_s20 }
 0x5d6   :  { %v244_v13 = vpop.permute.xlu2 %243 }
 0x5d7   :  { %v246_v14 = vmul.f32 %v244_v13, %v237_v10 }
 0x5d9   :  { %248 = vrot.lane.b32.xlu0 %v246_v14, %s834_s21 }
 0x64b   :  { %v249_v16 = vpop.permute.xlu0 %248 }
 0x64c   :  { %v251_v17 = vadd.f32 %v249_v16, %v241_v15 }
 0x64e   :  { %726 = vtanh.f32 %v251_v17 }
 0x654   :  { %v727_v18 = vpop.eup %726 }
 0x655   :  { %254 = vrot.lane.b32.xlu1 %v727_v18, %s833_s20 }
 0x6c7   :  { %v255_v20 = vpop.permute.xlu1 %254 }
 0x6c8   :  { %v257_v21 = vmul.f32 %v255_v20, %v237_v10  ;;  %v60_v20 = vld [vmem:[%s59_s3] sm:$0x1] }
 0x6ca   :  { %v580_v22 = vrot.slane %v257_v21, 6  ;;  %259 = vrot.lane.b32.xlu2 %v257_v21, %s834_s21 }
 0x6cc   :  { %v596_v24 = vsel %vm595_vm14, %v594_v23, %v580_v22  ;;  %vm601_vm14 = vcmask 1044480  }
 0x724   :  { %v260_v25 = vpop.permute.xlu2 %259 }
 0x725   :  { %685 = vmatmul.msk.f32.vlgmr.msra.gmra.mxu3 %vm67_vm4, %v260_v25 }
 0x7a8   :  { %v280_v27 = vpop.f32.mrf.mxu3 }
 0x7a9   :  { %v283_v28 = vadd.f32 %v280_v27, %v54_v26 }
 0x7ab   :  { %v686_v29 = vmul.f32 -1.442695, %v283_v28 }
 0x7ad   :  { %728 = vpow2.f32 %v686_v29 }
 0x7b3   :  { %v729_v31 = vpop.eup %728 }
 0x7b4   :  { %v287_v32 = vadd.f32 1.0, %v729_v31 }
 0x7b6   :  { %730 = vrcp.f32 %v287_v32  ;;  %v299_v36 = vand.u32 2147483648, %v287_v32  ;;  %v297_v30 = vand.u32 2147483647, %v287_v32  ;;  %vm293_vm0 = vweird.f32 %v287_v32 }
 0x7b8   :  { %v300_v39 = vor.u32 1.1754944e-38, %v299_v36  ;;  %vm298_vm2 = vcmp.eq.f32.partialorder %v297_v30, 8.507059e+37 }
 0x7bc   :  { %v731_v33 = vpop.eup %730 }
 0x7bd   :  { %v289_v34 = vmul.f32 %v731_v33, %v287_v32  ;;  %vm294_vm15 = vweird.f32 %v731_v33 }
 0x7be   :  { %vm295_vm1 = vmor %vm293_vm0, %vm294_vm15 }
 0x7bf   :  { %v290_v35 = vsub.f32 1.0, %v289_v34 }
 0x7c1   :  { %v291_v37 = vmul.f32 %v731_v33, %v290_v35 }
 0x7c3   :  { %v292_v38 = vadd.f32 %v731_v33, %v291_v37 }
 0x7c5   :  { %v296_v40 = vsel %vm295_vm1, %v731_v33, %v292_v38 }
 0x7c6   :  { %v301_v41 = vsel %vm298_vm2, %v300_v39, %v296_v40 }
 0x7c7   :  { %v303_v42 = vmul.f32 2.0, %v301_v41  ;;  %v305_v46 = vmul.f32 %v301_v41, %v251_v17 }
 0x7c9   :  { %v687_v43 = vadd.f32 -1.0, %v303_v42 }
 0x7cb   :  { %307 = vrot.lane.b32.xlu0 %v687_v43, %s833_s20 }
 0x83d   :  { %v308_v44 = vpop.permute.xlu0 %307 }
 0x83e   :  { %v310_v45 = vmul.f32 %v308_v44, %v301_v41 }
 0x840   :  { %312 = vrot.lane.b32.xlu1 %v310_v45, %s834_s21 }
 0x8b2   :  { %v313_v47 = vpop.permute.xlu1 %312 }
 0x8b3   :  { %v315_v48 = vadd.f32 %v313_v47, %v305_v46 }
 0x8b5   :  { %732 = vtanh.f32 %v315_v48 }
 0x8bb   :  { %v733_v49 = vpop.eup %732 }
 0x8bc   :  { %318 = vrot.lane.b32.xlu2 %v733_v49, %s833_s20  ;;  %v63_v49 = vld [vmem:[%s62_s5] sm:$0x1] }
 0x916   :  { %v319_v50 = vpop.permute.xlu2 %318 }
 0x917   :  { %v321_v51 = vmul.f32 %v319_v50, %v301_v41 }
 0x919   :  { %v582_v52 = vrot.slane %v321_v51, 5  ;;  %323 = vrot.lane.b32.xlu0 %v321_v51, %s834_s21 }
 0x91b   :  { %v598_v53 = vsel %vm597_vm3, %v596_v24, %v582_v52  ;;  %vm603_vm3 = vcmask 1045504  }
 0x98b   :  { %v324_v54 = vpop.permute.xlu0 %323 }
 0x98c   :  { %688 = vmatmul.msk.f32.vlgmr.msrb.gmra.mxu0 %vm67_vm4, %v324_v54 }
 0xa09   :  { %v344_v56 = vpop.f32.mrf.mxu0 }
 0xa0a   :  { %v347_v57 = vadd.f32 %v344_v56, %v57_v55 }
 0xa0c   :  { %v689_v58 = vmul.f32 -1.442695, %v347_v57 }
 0xa0e   :  { %734 = vpow2.f32 %v689_v58 }
 0xa14   :  { %v735_v59 = vpop.eup %734 }
 0xa15   :  { %v351_v60 = vadd.f32 1.0, %v735_v59 }
 0xa17   :  { %736 = vrcp.f32 %v351_v60  ;;  %v363_v0 = vand.u32 2147483648, %v351_v60  ;;  %v361_v2 = vand.u32 2147483647, %v351_v60  ;;  %vm357_vm6 = vweird.f32 %v351_v60 }
 0xa19   :  { %v364_v4 = vor.u32 1.1754944e-38, %v363_v0  ;;  %vm362_vm8 = vcmp.eq.f32.partialorder %v361_v2, 8.507059e+37 }
 0xa1d   :  { %v737_v61 = vpop.eup %736 }
 0xa1e   :  { %v353_v62 = vmul.f32 %v737_v61, %v351_v60  ;;  %vm358_vm5 = vweird.f32 %v737_v61 }
 0xa1f   :  { %vm359_vm7 = vmor %vm357_vm6, %vm358_vm5 }
 0xa20   :  { %v354_v63 = vsub.f32 1.0, %v353_v62 }
 0xa22   :  { %v355_v1 = vmul.f32 %v737_v61, %v354_v63 }
 0xa24   :  { %v356_v3 = vadd.f32 %v737_v61, %v355_v1 }
 0xa26   :  { %v360_v5 = vsel %vm359_vm7, %v737_v61, %v356_v3 }
 0xa27   :  { %v365_v6 = vsel %vm362_vm8, %v364_v4, %v360_v5 }
 0xa28   :  { %v367_v7 = vmul.f32 2.0, %v365_v6  ;;  %v369_v11 = vmul.f32 %v365_v6, %v315_v48 }
 0xa2a   :  { %v690_v8 = vadd.f32 -1.0, %v367_v7 }
 0xa2c   :  { %371 = vrot.lane.b32.xlu1 %v690_v8, %s833_s20 }
 0xa9e   :  { %v372_v9 = vpop.permute.xlu1 %371 }
 0xa9f   :  { %v374_v10 = vmul.f32 %v372_v9, %v365_v6 }
 0xaa1   :  { %376 = vrot.lane.b32.xlu2 %v374_v10, %s834_s21 }
 0xafb   :  { %v377_v12 = vpop.permute.xlu2 %376 }
 0xafc   :  { %v379_v13 = vadd.f32 %v377_v12, %v369_v11 }
 0xafe   :  { %738 = vtanh.f32 %v379_v13 }
 0xb04   :  { %v739_v14 = vpop.eup %738 }
 0xb05   :  { %382 = vrot.lane.b32.xlu0 %v739_v14, %s833_s20  ;;  %v66_v14 = vld [vmem:[%s65_s7] sm:$0x1] }
 0xb77   :  { %v383_v15 = vpop.permute.xlu0 %382 }
 0xb78   :  { %v385_v16 = vmul.f32 %v383_v15, %v365_v6 }
 0xb7a   :  { %v584_v17 = vrot.slane %v385_v16, 4  ;;  %387 = vrot.lane.b32.xlu1 %v385_v16, %s834_s21 }
 0xb7c   :  { %v600_v18 = vsel %vm599_vm9, %v598_v53, %v584_v17  ;;  %vm605_vm9 = vcmask 1046528  }
 0xbec   :  { %v388_v19 = vpop.permute.xlu1 %387 }
 0xbed   :  { %691 = vmatmul.msk.f32.vlgmr.msrb.gmra.mxu1 %vm67_vm4, %v388_v19 }
 0xc6a   :  { %v408_v21 = vpop.f32.mrf.mxu1 }
 0xc6b   :  { %v411_v22 = vadd.f32 %v408_v21, %v60_v20 }
 0xc6d   :  { %v692_v23 = vmul.f32 -1.442695, %v411_v22 }
 0xc6f   :  { %740 = vpow2.f32 %v692_v23 }
 0xc75   :  { %v741_v24 = vpop.eup %740 }
 0xc76   :  { %v415_v25 = vadd.f32 1.0, %v741_v24 }
 0xc78   :  { %742 = vrcp.f32 %v415_v25  ;;  %v427_v29 = vand.u32 2147483648, %v415_v25  ;;  %v425_v32 = vand.u32 2147483647, %v415_v25  ;;  %vm421_vm11 = vweird.f32 %v415_v25 }
 0xc7a   :  { %v428_v34 = vor.u32 1.1754944e-38, %v427_v29  ;;  %vm426_vm13 = vcmp.eq.f32.partialorder %v425_v32, 8.507059e+37 }
 0xc7e   :  { %v743_v26 = vpop.eup %742 }
 0xc7f   :  { %v417_v27 = vmul.f32 %v743_v26, %v415_v25  ;;  %vm422_vm10 = vweird.f32 %v743_v26 }
 0xc80   :  { %vm423_vm12 = vmor %vm421_vm11, %vm422_vm10 }
 0xc81   :  { %v418_v28 = vsub.f32 1.0, %v417_v27 }
 0xc83   :  { %v419_v31 = vmul.f32 %v743_v26, %v418_v28 }
 0xc85   :  { %v420_v33 = vadd.f32 %v743_v26, %v419_v31 }
 0xc87   :  { %v424_v35 = vsel %vm423_vm12, %v743_v26, %v420_v33 }
 0xc88   :  { %v429_v36 = vsel %vm426_vm13, %v428_v34, %v424_v35 }
 0xc89   :  { %v431_v37 = vmul.f32 2.0, %v429_v36  ;;  %v433_v40 = vmul.f32 %v429_v36, %v379_v13 }
 0xc8b   :  { %v693_v30 = vadd.f32 -1.0, %v431_v37 }
 0xc8d   :  { %435 = vrot.lane.b32.xlu2 %v693_v30, %s833_s20 }
 0xce7   :  { %v436_v38 = vpop.permute.xlu2 %435 }
 0xce8   :  { %v438_v39 = vmul.f32 %v436_v38, %v429_v36  ;;  %v41_v38 = vld [vmem:[#allocation4 + $0x48] sm:$0xff] }
 0xce9   :  { %625 = vmatpush.msra.mxu0 %v41_v38 }
 0xcea   :  { %440 = vrot.lane.b32.xlu0 %v438_v39, %s834_s21  ;;  %v40_v39 = vld [vmem:[#allocation4 + $0x40] sm:$0xff] }
 0xceb   :  { %626 = vmatpush.msra.mxu0 %v40_v39 }
 0xd5c   :  { %v441_v41 = vpop.permute.xlu0 %440 }
 0xd5d   :  { %v443_v42 = vadd.f32 %v441_v41, %v433_v40  ;;  %v39_v40 = vld [vmem:[#allocation4 + $0x38] sm:$0xff]  ;;  %v38_v41 = vld [vmem:[#allocation4 + $0x30] sm:$0xff] }
 0xd5e   :  { %627 = vmatpush.msra.mxu0 %v39_v40 }
 0xd5f   :  { %744 = vtanh.f32 %v443_v42 }
 0xd60   :  { %628 = vmatpush.msra.mxu0 %v38_v41 }
 0xd65   :  { %v745_v43 = vpop.eup %744 }
 0xd66   :  { %446 = vrot.lane.b32.xlu1 %v745_v43, %s833_s20 }
 0xdd8   :  { %v447_v44 = vpop.permute.xlu1 %446 }
 0xdd9   :  { %v449_v45 = vmul.f32 %v447_v44, %v429_v36 }
 0xddb   :  { %v586_v46 = vrot.slane %v449_v45, 3  ;;  %451 = vrot.lane.b32.xlu2 %v449_v45, %s834_s21 }
 0xddd   :  { %v602_v47 = vsel %vm601_vm14, %v600_v18, %v586_v46 }
 0xe35   :  { %v452_v48 = vpop.permute.xlu2 %451 }
 0xe36   :  { %694 = vmatmul.msk.f32.vlgmr.msrb.gmra.mxu2 %vm67_vm4, %v452_v48 }
 0xeb9   :  { %v472_v50 = vpop.f32.mrf.mxu2 }
 0xeba   :  { %v475_v51 = vadd.f32 %v472_v50, %v63_v49 }
 0xebc   :  { %v695_v52 = vmul.f32 -1.442695, %v475_v51 }
 0xebe   :  { %746 = vpow2.f32 %v695_v52 }
 0xec4   :  { %v747_v53 = vpop.eup %746 }
 0xec5   :  { %v479_v54 = vadd.f32 1.0, %v747_v53 }
 0xec7   :  { %748 = vrcp.f32 %v479_v54  ;;  %v491_v58 = vand.u32 2147483648, %v479_v54  ;;  %v489_v60 = vand.u32 2147483647, %v479_v54  ;;  %vm485_vm0 = vweird.f32 %v479_v54 }
 0xec9   :  { %v492_v62 = vor.u32 1.1754944e-38, %v491_v58  ;;  %vm490_vm2 = vcmp.eq.f32.partialorder %v489_v60, 8.507059e+37 }
 0xecd   :  { %v749_v55 = vpop.eup %748 }
 0xece   :  { %v481_v56 = vmul.f32 %v749_v55, %v479_v54  ;;  %vm486_vm15 = vweird.f32 %v749_v55 }
 0xecf   :  { %vm487_vm1 = vmor %vm485_vm0, %vm486_vm15 }
 0xed0   :  { %v482_v57 = vsub.f32 1.0, %v481_v56 }
 0xed2   :  { %v483_v59 = vmul.f32 %v749_v55, %v482_v57 }
 0xed4   :  { %v484_v61 = vadd.f32 %v749_v55, %v483_v59 }
 0xed6   :  { %v488_v63 = vsel %vm487_vm1, %v749_v55, %v484_v61 }
 0xed7   :  { %v493_v0 = vsel %vm490_vm2, %v492_v62, %v488_v63 }
 0xed8   :  { %v495_v1 = vmul.f32 2.0, %v493_v0  ;;  %v497_v5 = vmul.f32 %v493_v0, %v443_v42 }
 0xeda   :  { %v696_v2 = vadd.f32 -1.0, %v495_v1 }
 0xedc   :  { %499 = vrot.lane.b32.xlu0 %v696_v2, %s833_s20 }
 0xf4e   :  { %v500_v3 = vpop.permute.xlu0 %499 }
 0xf4f   :  { %v502_v4 = vmul.f32 %v500_v3, %v493_v0 }
 0xf51   :  { %504 = vrot.lane.b32.xlu1 %v502_v4, %s834_s21 }
 0xfc3   :  { %v505_v6 = vpop.permute.xlu1 %504 }
 0xfc4   :  { %v507_v7 = vadd.f32 %v505_v6, %v497_v5 }
 0xfc6   :  { %750 = vtanh.f32 %v507_v7 }
 0xfcc   :  { %v751_v8 = vpop.eup %750 }
 0xfcd   :  { %510 = vrot.lane.b32.xlu2 %v751_v8, %s833_s20 }
0x1027   :  { %v511_v9 = vpop.permute.xlu2 %510 }
0x1028   :  { %v513_v10 = vmul.f32 %v511_v9, %v493_v0 }
0x102a   :  { %v588_v11 = vrot.slane %v513_v10, 2  ;;  %515 = vrot.lane.b32.xlu0 %v513_v10, %s834_s21 }
0x102c   :  { %v604_v12 = vsel %vm603_vm3, %v602_v47, %v588_v11  ;;  %v709_v47 = vld [vmem:[#allocation4 + $0x50] ss:$0 sm:$0xff] }
0x109c   :  { %v516_v13 = vpop.permute.xlu0 %515 }
0x109d   :  { %697 = vmatmul.msk.f32.vlgmr.msrb.gmra.mxu3 %vm67_vm4, %v516_v13 }
0x1120   :  { %v536_v15 = vpop.f32.mrf.mxu3 }
0x1121   :  { %v539_v16 = vadd.f32 %v536_v15, %v66_v14 }
0x1123   :  { %v698_v17 = vmul.f32 -1.442695, %v539_v16 }
0x1125   :  { %752 = vpow2.f32 %v698_v17 }
0x112b   :  { %v753_v18 = vpop.eup %752 }
0x112c   :  { %v543_v19 = vadd.f32 1.0, %v753_v18 }
0x112e   :  { %754 = vrcp.f32 %v543_v19  ;;  %v555_v23 = vand.u32 2147483648, %v543_v19  ;;  %v553_v25 = vand.u32 2147483647, %v543_v19  ;;  %vm549_vm6 = vweird.f32 %v543_v19 }
0x1130   :  { %v556_v27 = vor.u32 1.1754944e-38, %v555_v23  ;;  %vm554_vm8 = vcmp.eq.f32.partialorder %v553_v25, 8.507059e+37 }
0x1134   :  { %v755_v20 = vpop.eup %754 }
0x1135   :  { %v545_v21 = vmul.f32 %v755_v20, %v543_v19  ;;  %vm550_vm5 = vweird.f32 %v755_v20 }
0x1136   :  { %vm551_vm7 = vmor %vm549_vm6, %vm550_vm5 }
0x1137   :  { %v546_v22 = vsub.f32 1.0, %v545_v21 }
0x1139   :  { %v547_v24 = vmul.f32 %v755_v20, %v546_v22 }
0x113b   :  { %v548_v26 = vadd.f32 %v755_v20, %v547_v24 }
0x113d   :  { %v552_v28 = vsel %vm551_vm7, %v755_v20, %v548_v26 }
0x113e   :  { %v557_v29 = vsel %vm554_vm8, %v556_v27, %v552_v28 }
0x113f   :  { %v559_v31 = vmul.f32 2.0, %v557_v29  ;;  %v561_v35 = vmul.f32 %v557_v29, %v507_v7 }
0x1141   :  { %v699_v32 = vadd.f32 -1.0, %v559_v31 }
0x1143   :  { %563 = vrot.lane.b32.xlu1 %v699_v32, %s833_s20 }
0x11b5   :  { %v564_v33 = vpop.permute.xlu1 %563 }
0x11b6   :  { %v566_v34 = vmul.f32 %v564_v33, %v557_v29 }
0x11b8   :  { %568 = vrot.lane.b32.xlu2 %v566_v34, %s834_s21 }
0x1212   :  { %v569_v36 = vpop.permute.xlu2 %568 }
0x1213   :  { %v571_v37 = vadd.f32 %v569_v36, %v561_v35 }
0x1215   :  { %756 = vtanh.f32 %v571_v37 }
0x121b   :  { %v757_v30 = vpop.eup %756 }
0x121c   :  { %574 = vrot.lane.b32.xlu0 %v757_v30, %s833_s20 }
0x128e   :  { %v575_v42 = vpop.permute.xlu0 %574 }
0x128f   :  { %v577_v43 = vmul.f32 %v575_v42, %v557_v29 }
0x1291   :  { %v591_v44 = vrot.slane %v577_v43, 1 }
0x1293   :  { %v606_v45 = vsel %vm605_vm9, %v604_v12, %v591_v44 }
0x1294   :  { %609 = vrot.lane.b32.xlu1 %v606_v45, %s834_s21 }
0x1306   :  { %v610_v46 = vpop.permute.xlu1 %609 }
0x1307   :  { %700 = vmatmul.msk.f32.vlgmr.msra.gmra.mxu0 %vm67_vm4, %v610_v46 }
0x1384   :  { %v630_v48 = vpop.f32.mrf.mxu0 }
0x1385   :  { %v631_v49 = vadd.f32 %v709_v47, %v630_v48 }
0x1387   :  { %633 = vmax.xlane.f32.xlu2 %v631_v49 }
0x13fa   :  { %v634_v50 = vpop.xlane.xlu2 %633 }
0x13fb   :  { %v635_v51 = vsub.f32 %v631_v49, %v634_v50 }
0x13fd   :  { %v636_v52 = vmul.f32 1.442695, %v635_v51 }
0x13ff   :  { %758 = vpow2.f32 %v636_v52 }
0x1405   :  { %v759_v53 = vpop.eup %758 }
0x1406   :  { %638 = vadd.xlane.f32.xlu0 %v759_v53 }
0x1479   :  { %v639_v54 = vpop.xlane.xlu0 %638 }
0x147a   :  { %760 = vlog2.f32 %v639_v54 }
0x1480   :  { %v761_v55 = vpop.eup %760 }
0x1481   :  { %v641_v56 = vmul.f32 0.6931472, %v761_v55 }
0x1483   :  { %v642_v57 = vadd.f32 %v641_v56, %v634_v50 }
0x1485   :  { %v643_v58 = vsub.f32 %v631_v49, %v642_v57 }
0x1487   :  { %644 = vst [vmem:[#allocation7] sm:$0xff] %v643_v58 }
0x1488   :  { %655 = dma.vmem_to_hbm [thread:$0]  %s651_s9, 128, %s653_s12, [#allocation6]  }
0x1489   :  { %826 = dma.done.wait [#allocation6], 128  }
0x148a   :  { %827 = vsyncadd [#allocation6], 4294967168 }
0x148b   :  { %660 = vsyncpa [#allocation5], 1 }
0x148c   :  { %661 = vsyncpa [#allocation6], 1 }

</bundles_post_ra>
